<compile_context>
chip_gen: v5e
topology: v5e:2x2
jax: 0.10.0
libtpu: 0.0.40
codegen_flags: <defaults>
</compile_context>

<pallas_src>
import jax
import jax.numpy as jnp
from jax.experimental import pallas as pl
from jax.experimental.pallas import tpu as pltpu

IN_FEATURES = 784
OUT_FEATURES = 10

K_PAD = 896       # 7 * 128 — lane-aligned contraction dim
OUT_PAD = 128     # lane-dense output width
TB_MAX = 1024     # batch tile: bf16 x tile ~1.75 MiB, f32 out tile 0.5 MiB
                  # -> well under the 32 MiB scoped-VMEM default (and v7x's 64 MiB)

NEG_BIG = -1.0e30  # finite "minus infinity": exp underflows to exactly 0.0


def _round_up(n, m):
    return (n + m - 1) // m * m


def net_kernel(x_ref, w_ref, b_ref, o_ref):
    # x_ref: (TB, K_PAD) bf16   w_ref: (K_PAD, OUT_PAD) bf16
    # b_ref: (1, OUT_PAD) f32 (NEG_BIG in padded classes)   o_ref: (TB, OUT_PAD) f32
    logits = jnp.dot(x_ref[...], w_ref[...],
                     preferred_element_type=jnp.float32) + b_ref[...]
    # Numerically stable softmax over classes, all math in f32.
    m = jnp.max(logits, axis=1, keepdims=True)
    e = jnp.exp(logits - m)                      # padded cols underflow to 0.0
    denom = jnp.sum(e, axis=1, keepdims=True)
    o_ref[...] = (e / denom).astype(o_ref.dtype)  # exact divide -> rows sum to 1


def net_forward(x, w, b, *, tb=TB_MAX):
    """x: (B, 1, 28, 28) or (B, 784).  w: (784, 10).  b: (10,).  Returns (B, 10) f32."""
    B = x.shape[0]
    x2d = x.reshape(B, -1).astype(jnp.float32)
    assert x2d.shape[1] == IN_FEATURES

    # Tile size: cap at TB_MAX, keep sublane-aligned for small batches.
    tb = min(tb, _round_up(B, 8))
    b_rows = _round_up(B, tb)

    # bf16 inputs (halve HBM traffic), zero-padded to lane-aligned shapes.
    x_p = jnp.zeros((b_rows, K_PAD), jnp.bfloat16)
    x_p = x_p.at[:B, :IN_FEATURES].set(x2d.astype(jnp.bfloat16))

    w_p = jnp.zeros((K_PAD, OUT_PAD), jnp.bfloat16)
    w_p = w_p.at[:IN_FEATURES, :OUT_FEATURES].set(w.astype(jnp.bfloat16))

    # Very negative (finite) bias on padded classes keeps the softmax identical
    # to the 10-way one: exp() of those columns is exactly 0.
    b_p = jnp.full((1, OUT_PAD), NEG_BIG, jnp.float32)
    b_p = b_p.at[0, :OUT_FEATURES].set(b.reshape(-1).astype(jnp.float32))

    grid = (b_rows // tb,)
    out_padded = pl.pallas_call(
        net_kernel,
        out_shape=jax.ShapeDtypeStruct((b_rows, OUT_PAD), jnp.float32),
        grid=grid,
        in_specs=[
            pl.BlockSpec((tb, K_PAD), lambda i: (i, 0)),        # x: tiled over batch
            pl.BlockSpec((K_PAD, OUT_PAD), lambda i: (0, 0)),   # W: resident
            pl.BlockSpec((1, OUT_PAD), lambda i: (0, 0)),       # b: resident
        ],
        out_specs=pl.BlockSpec((tb, OUT_PAD), lambda i: (i, 0)),
        compiler_params=pltpu.CompilerParams(
            dimension_semantics=("parallel",),     # megacore sharding on v7x
            vmem_limit_bytes=32 * 1024 * 1024,     # explicit, safe on v5e/v6e/v7x
        ),
    )(x_p, w_p, b_p)

    return out_padded[:B, :OUT_FEATURES]


if __name__ == "__main__":
    key = jax.random.PRNGKey(0)
    kx, kw, kb = jax.random.split(key, 3)

    B = 8
    # MNIST-shaped NCHW input
    x = jax.random.normal(kx, (B, 1, 28, 28), dtype=jnp.float32)

    # Deterministic parameter init (same uniform bound as torch Linear default)
    bound = 1.0 / (IN_FEATURES ** 0.5)
    w = jax.random.uniform(kw, (IN_FEATURES, OUT_FEATURES),
                           minval=-bound, maxval=bound, dtype=jnp.float32)
    b = jax.random.uniform(kb, (OUT_FEATURES,),
                           minval=-bound, maxval=bound, dtype=jnp.float32)

    out = net_forward(x, w, b)
    out = jax.block_until_ready(out)

    x2d = x.reshape(B, -1)
    # Precision-matched reference (bf16 inputs, f32 accumulate), plus f32 reference.
    ref_bf16 = jax.nn.softmax(
        jnp.dot(x2d.astype(jnp.bfloat16), w.astype(jnp.bfloat16),
                preferred_element_type=jnp.float32) + b, axis=1)
    ref_f32 = jax.nn.softmax(x2d @ w + b, axis=1)

    assert out.shape == (B, OUT_FEATURES)
    assert bool(jnp.allclose(jnp.sum(out, axis=1), 1.0, atol=1e-3))
    assert bool(jnp.allclose(out, ref_bf16, atol=2e-3))
    assert bool(jnp.allclose(out, ref_f32, atol=1e-2))

    print("KERNEL_OK")
</pallas_src>

<mosaic_0001>
module attributes {stable_mosaic.version = 11 : i64} {
  func.func @net_kernel(%arg0: i32, %arg1: memref<8x896xbf16, #tpu.memory_space<vmem>>, %arg2: memref<896x128xbf16, #tpu.memory_space<vmem>>, %arg3: memref<1x128xf32, #tpu.memory_space<vmem>>, %arg4: memref<8x128xf32, #tpu.memory_space<vmem>>) attributes {dimension_semantics = [#tpu.dimension_semantics<parallel>], iteration_bounds = array<i64: 1>, scalar_prefetch = 0 : i64, scratch_operands = 0 : i64, tpu.core_type = #tpu.core_type<tc>, window_params = [{transform_indices = @transform_0, window_bounds = array<i64: 8, 896>}, {pipeline_mode = #tpu.pipeline_mode<synchronous>, transform_indices = @transform_1, window_bounds = array<i64: 896, 128>}, {pipeline_mode = #tpu.pipeline_mode<synchronous>, transform_indices = @transform_2, window_bounds = array<i64: 1, 128>}, {transform_indices = @transform_3, window_bounds = array<i64: 8, 128>}]} {
    %c0 = arith.constant 0 : index
    %c0_0 = arith.constant 0 : index
    %0 = vector.load %arg1[%c0, %c0_0] : memref<8x896xbf16, #tpu.memory_space<vmem>>, vector<8x896xbf16>
    %c0_1 = arith.constant 0 : index
    %c0_2 = arith.constant 0 : index
    %1 = vector.load %arg2[%c0_1, %c0_2] : memref<896x128xbf16, #tpu.memory_space<vmem>>, vector<896x128xbf16>
    %cst = arith.constant dense<0.000000e+00> : vector<8x128xf32>
    %2 = tpu.matmul %0, %1, %cst {dimension_numbers = #tpu.dot_dimension_numbers<[1], [0], [0], [1], [0, 0, 1, 1], [], []>} : vector<8x896xbf16>, vector<896x128xbf16>, vector<8x128xf32> -> vector<8x128xf32>
    %c0_3 = arith.constant 0 : index
    %c0_4 = arith.constant 0 : index
    %3 = vector.load %arg3[%c0_3, %c0_4] : memref<1x128xf32, #tpu.memory_space<vmem>>, vector<1x128xf32>
    %4 = vector.broadcast %3 : vector<1x128xf32> to vector<8x128xf32>
    %5 = arith.addf %2, %4 : vector<8x128xf32>
    %cst_5 = arith.constant dense<0xFF800000> : vector<8xf32>
    %6 = vector.multi_reduction <maximumf>, %5, %cst_5 [1] : vector<8x128xf32> to vector<8xf32>
    %7 = vector.shape_cast %6 : vector<8xf32> to vector<8x1xf32>
    %8 = vector.broadcast %7 : vector<8x1xf32> to vector<8x128xf32>
    %9 = arith.subf %5, %8 : vector<8x128xf32>
    %10 = math.exp %9 : vector<8x128xf32>
    %cst_6 = arith.constant dense<0.000000e+00> : vector<8xf32>
    %11 = vector.multi_reduction <add>, %10, %cst_6 [1] : vector<8x128xf32> to vector<8xf32>
    %12 = vector.shape_cast %11 : vector<8xf32> to vector<8x1xf32>
    %13 = vector.broadcast %12 : vector<8x1xf32> to vector<8x128xf32>
    %14 = arith.divf %10, %13 : vector<8x128xf32>
    %c0_7 = arith.constant 0 : index
    %c0_8 = arith.constant 0 : index
    %15 = vector.load %arg4[%c0_7, %c0_8] : memref<8x128xf32, #tpu.memory_space<vmem>>, vector<8x128xf32>
    tpu.vector_store %arg4[%c0_7, %c0_8], %14 {strides = array<i32>} : memref<8x128xf32, #tpu.memory_space<vmem>>, vector<8x128xf32>,
    return
  }
  func.func @transform_0(%arg0: i32) -> (i32, i32) {
    %c0_i32 = arith.constant 0 : i32
    %c0_i32_0 = arith.constant 0 : i32
    return %arg0, %c0_i32 : i32, i32
  }
  func.func @transform_1(%arg0: i32) -> (i32, i32) {
    %c0_i32 = arith.constant 0 : i32
    %c0_i32_0 = arith.constant 0 : i32
    %c0_i32_1 = arith.constant 0 : i32
    return %c0_i32, %c0_i32_0 : i32, i32
  }
  func.func @transform_2(%arg0: i32) -> (i32, i32) {
    %c0_i32 = arith.constant 0 : i32
    %c0_i32_0 = arith.constant 0 : i32
    %c0_i32_1 = arith.constant 0 : i32
    return %c0_i32, %c0_i32_0 : i32, i32
  }
  func.func @transform_3(%arg0: i32) -> (i32, i32) {
    %c0_i32 = arith.constant 0 : i32
    %c0_i32_0 = arith.constant 0 : i32
    return %arg0, %c0_i32 : i32, i32
  }
}

</mosaic_0001>

<bundles_post_ra>
// kernel: tpu_custom_call.1
= control target key start
LH: loop header
LB: loop body
LE: loop exit
PB: predicated region body
PF: predicated region fallthrough
CT: control target
= control target key end

     0   :  { %8 = vsyncpa [#allocation3], 0  ;;  %s1063_s0 = inlined_call_operand.hbm [shape: bf16[8,896], index: 0, kind: input, shape index: {}]   ;;  %s1064_s1 = inlined_call_operand.hbm [shape: bf16[896,128], index: 1, kind: input, shape index: {}]   ;;  %s1065_s2 = inlined_call_operand.vmem [shape: f32[1,128], index: 2, kind: input, shape index: {}]   ;;  %s1066_s3 = inlined_call_operand.hbm [shape: f32[8,128], index: 3, kind: output, shape index: {}]  }
   0x1   :  { %9 = vsyncpa [#allocation6], 0 }
   0x2   :  { %10 = vsyncpa [#allocation4], 0  ;;  %s16_s14 = sshll.u32 %s1063_s0, 4  ;;  %s1026_s15 = smov [#allocation2]   ;;  %s17_s14 = int_to_ptr.hbm [resolvable:$true] %s16_s14 }
   0x3   :  { %s18_s16 = sshll.u32 %s1026_s15, 4  ;;  %s26_s19 = sshll.u32 %s1064_s1, 4  ;;  %s19_s16 = int_to_ptr.vmem [resolvable:$true] %s18_s16  ;;  %s27_s19 = int_to_ptr.hbm [resolvable:$true] %s26_s19 }
   0x4   :  { %21 = dma.hbm_to_vmem [thread:$0]  %s17_s14, 448, %s19_s16, [#allocation3]  }
   0x5   :  { %s1027_s20 = smov [#allocation5]   ;;  %s1028_s22 = smov 64  }
   0x6   :  { %s28_s21 = sshll.u32 %s1027_s20, 4  ;;  %s1029_s23 = smov 4   ;;  %s29_s21 = int_to_ptr.vmem [resolvable:$true] %s28_s21 }
   0x7   :  { %34 = dma.hbm_to_vmem [thread:$0]  %s27_s19, 7168, %s29_s21, [#allocation6], %s1028_s22, %s1028_s22, %s1029_s23  }
   0x8   :  { %1020 = dma.done.wait [#allocation3], 448  }
   0x9   :  { %1021 = vsyncadd [#allocation3], 4294966848 }
   0xa   :  { %1022 = dma.done.wait [#allocation6], 7168  }
   0xb   :  { %1023 = vsyncadd [#allocation6], 4294960128  ;;  %v889_v0 = vld [vmem:[#allocation5 + $0x38] sm:$0xff]  ;;  %v888_v3 = vld [vmem:[#allocation5 + $0x30] sm:$0xff]  ;;  %s647_s27 = sshll.u32 %s1066_s3, 4  ;;  %s648_s27 = int_to_ptr.hbm [resolvable:$true] %s647_s27 }
   0xc   :  { %v897_v1 = vld [vmem:[#allocation5 + $0x78] sm:$0xff]  ;;  %526 = vmatpush.bf16.msra.mxu0 %v889_v0  ;;  %v896_v4 = vld [vmem:[#allocation5 + $0x70] sm:$0xff]  ;;  %v887_v7 = vld [vmem:[#allocation5 + $0x28] sm:$0xff] }
   0xd   :  { %v905_v2 = vld [vmem:[#allocation5 + $0xb8] sm:$0xff]  ;;  %539 = vmatpush.bf16.msra.mxu1 %v897_v1  ;;  %v904_v5 = vld [vmem:[#allocation5 + $0xb0] sm:$0xff]  ;;  %v895_v8 = vld [vmem:[#allocation5 + $0x68] sm:$0xff] }
   0xe   :  { %552 = vmatpush.bf16.msra.mxu2 %v905_v2  ;;  %v913_v6 = vld [vmem:[#allocation5 + $0xf8] sm:$0xff]  ;;  %v903_v9 = vld [vmem:[#allocation5 + $0xa8] sm:$0xff]  ;;  %v912_v10 = vld [vmem:[#allocation5 + $0xf0] sm:$0xff] }
   0xf   :  { %565 = vmatpush.bf16.msra.mxu3 %v913_v6  ;;  %v886_v11 = vld [vmem:[#allocation5 + $0x20] sm:$0xff]  ;;  %v911_v14 = vld [vmem:[#allocation5 + $0xe8] sm:$0xff]  ;;  %v885_v15 = vld [vmem:[#allocation5 + $0x18] sm:$0xff] }
  0x10   :  { %527 = vmatpush.bf16.msra.mxu0 %v888_v3  ;;  %v894_v12 = vld [vmem:[#allocation5 + $0x60] sm:$0xff]  ;;  %v893_v16 = vld [vmem:[#allocation5 + $0x58] sm:$0xff]  ;;  %v884_v19 = vld [vmem:[#allocation5 + $0x10] sm:$0xff] }
  0x11   :  { %540 = vmatpush.bf16.msra.mxu1 %v896_v4  ;;  %v902_v13 = vld [vmem:[#allocation5 + $0xa0] sm:$0xff]  ;;  %v901_v17 = vld [vmem:[#allocation5 + $0x98] sm:$0xff]  ;;  %v892_v20 = vld [vmem:[#allocation5 + $0x50] sm:$0xff] }
  0x12   :  { %553 = vmatpush.bf16.msra.mxu2 %v904_v5  ;;  %v910_v18 = vld [vmem:[#allocation5 + $0xe0] sm:$0xff]  ;;  %v900_v21 = vld [vmem:[#allocation5 + $0x90] sm:$0xff]  ;;  %v909_v22 = vld [vmem:[#allocation5 + $0xd8] sm:$0xff] }
  0x13   :  { %566 = vmatpush.bf16.msra.mxu3 %v912_v10  ;;  %v883_v23 = vld [vmem:[#allocation5 + $0x8] sm:$0xff]  ;;  %v908_v27 = vld [vmem:[#allocation5 + $0xd0] sm:$0xff]  ;;  %v882_v30 = vld [vmem:[#allocation5] sm:$0xff] }
  0x14   :  { %528 = vmatpush.bf16.msra.mxu0 %v887_v7  ;;  %v891_v24 = vld [vmem:[#allocation5 + $0x48] sm:$0xff]  ;;  %v890_v31 = vld [vmem:[#allocation5 + $0x40] sm:$0xff]  ;;  %v921_v35 = vld [vmem:[#allocation5 + $0x138] sm:$0xff] }
  0x15   :  { %541 = vmatpush.bf16.msra.mxu1 %v895_v8  ;;  %v45_v25 = vld [vmem:[#allocation2] sm:$0xff]  ;;  %v46_v28 = vld [vmem:[#allocation2 + $0x8] sm:$0xff]  ;;  %v929_v36 = vld [vmem:[#allocation5 + $0x178] sm:$0xff] }
  0x16   :  { %554 = vmatpush.bf16.msra.mxu2 %v903_v9  ;;  %v899_v26 = vld [vmem:[#allocation5 + $0x88] sm:$0xff]  ;;  %v169_v29 = vunpack.c.l.b16 %v45_v25  ;;  %v171_v32 = vunpack.c.l.b16 %v46_v28  ;;  %v170_v33 = vunpack.c.h.b16 %v45_v25  ;;  %v898_v34 = vld [vmem:[#allocation5 + $0x80] sm:$0xff]  ;;  %v937_v37 = vld [vmem:[#allocation5 + $0x1b8] sm:$0xff]  ;;  %v172_v46 = vunpack.c.h.b16 %v46_v28 }
  0x17   :  { %567 = vmatpush.bf16.msra.mxu3 %v911_v14  ;;  %v907_v39 = vld [vmem:[#allocation5 + $0xc8] sm:$0xff]  ;;  %v920_v42 = vld [vmem:[#allocation5 + $0x130] sm:$0xff]  ;;  %v906_v45 = vld [vmem:[#allocation5 + $0xc0] sm:$0xff] }
  0x18   :  { %529 = vmatpush.bf16.msra.mxu0 %v886_v11  ;;  %v176_v38 = vpack.c.b16 %v169_v29, %v169_v29  ;;  %v178_v40 = vpack.c.b16 %v171_v32, %v171_v32  ;;  %v177_v41 = vpack.c.b16 %v170_v33, %v170_v33  ;;  %v928_v43 = vld [vmem:[#allocation5 + $0x170] sm:$0xff]  ;;  %v919_v47 = vld [vmem:[#allocation5 + $0x128] sm:$0xff]  ;;  %v179_v50 = vpack.c.b16 %v172_v46, %v172_v46  ;;  %v918_v51 = vld [vmem:[#allocation5 + $0x120] sm:$0xff] }
  0x19   :  { %542 = vmatpush.bf16.msra.mxu1 %v894_v12  ;;  %v936_v44 = vld [vmem:[#allocation5 + $0x1b0] sm:$0xff]  ;;  %v927_v48 = vld [vmem:[#allocation5 + $0x168] sm:$0xff]  ;;  %v926_v52 = vld [vmem:[#allocation5 + $0x160] sm:$0xff] }
  0x1a   :  { %555 = vmatpush.bf16.msra.mxu2 %v902_v13  ;;  %v935_v49 = vld [vmem:[#allocation5 + $0x1a8] sm:$0xff]  ;;  %v934_v53 = vld [vmem:[#allocation5 + $0x1a0] sm:$0xff]  ;;  %v917_v54 = vld [vmem:[#allocation5 + $0x118] sm:$0xff] }
  0x1b   :  { %568 = vmatpush.bf16.msra.mxu3 %v910_v18  ;;  %v925_v55 = vld [vmem:[#allocation5 + $0x158] sm:$0xff]  ;;  %v916_v57 = vld [vmem:[#allocation5 + $0x110] sm:$0xff]  ;;  %v915_v60 = vld [vmem:[#allocation5 + $0x108] sm:$0xff] }
  0x1c   :  { %530 = vmatpush.bf16.msra.mxu0 %v885_v15  ;;  %v933_v56 = vld [vmem:[#allocation5 + $0x198] sm:$0xff]  ;;  %v924_v58 = vld [vmem:[#allocation5 + $0x150] sm:$0xff]  ;;  %v923_v62 = vld [vmem:[#allocation5 + $0x148] sm:$0xff] }
  0x1d   :  { %543 = vmatpush.bf16.msra.mxu1 %v893_v16  ;;  %v932_v59 = vld [vmem:[#allocation5 + $0x190] sm:$0xff]  ;;  %v931_v63 = vld [vmem:[#allocation5 + $0x188] sm:$0xff]  ;;  %v48_v0 = vld [vmem:[#allocation2 + $0x18] sm:$0xf] }
  0x1e   :  { %556 = vmatpush.bf16.msra.mxu2 %v901_v17  ;;  %v47_v61 = vld [vmem:[#allocation2 + $0x10] sm:$0xff]  ;;  %v914_v2 = vld [vmem:[#allocation5 + $0x100] sm:$0xff]  ;;  %v175_v4 = vunpack.c.l.b16 %v48_v0 }
  0x1f   :  { %569 = vmatpush.bf16.msra.mxu3 %v909_v22  ;;  %v173_v1 = vunpack.c.l.b16 %v47_v61  ;;  %v174_v3 = vunpack.c.h.b16 %v47_v61  ;;  %v922_v5 = vld [vmem:[#allocation5 + $0x140] sm:$0xff] }
  0x20   :  { %531 = vmatpush.bf16.msra.mxu0 %v884_v19  ;;  %v930_v6 = vld [vmem:[#allocation5 + $0x180] sm:$0xff]  ;;  %v182_v9 = vpack.c.b16 %v175_v4, %v175_v4 }
  0x21   :  { %544 = vmatpush.bf16.msra.mxu1 %v892_v20  ;;  %v180_v7 = vpack.c.b16 %v173_v1, %v173_v1  ;;  %v181_v8 = vpack.c.b16 %v174_v3, %v174_v3  ;;  %v943_v15 = vld [vmem:[%s1065_s2] ss:$0 sm:$0xff]  ;;  %s1030_s2 = smov [#allocation7]  }
  0x22   :  { %557 = vmatpush.bf16.msra.mxu2 %v900_v21  ;;  %s645_s24 = sshll.u32 %s1030_s2, 4  ;;  %s646_s24 = int_to_ptr.vmem [resolvable:$true] %s645_s24 }
  0x23   :  { %570 = vmatpush.bf16.msra.mxu3 %v908_v27 }
  0x24   :  { %532 = vmatpush.bf16.msra.mxu0 %v883_v23 }
  0x25   :  { %545 = vmatpush.bf16.msra.mxu1 %v891_v24 }
  0x26   :  { %558 = vmatpush.bf16.msra.mxu2 %v899_v26 }
  0x27   :  { %571 = vmatpush.bf16.msra.mxu3 %v907_v39 }
  0x28   :  { %533 = vmatpush.bf16.msra.mxu0 %v882_v30 }
  0x29   :  { %546 = vmatpush.bf16.msra.mxu1 %v890_v31 }
  0x2a   :  { %559 = vmatpush.bf16.msra.mxu2 %v898_v34 }
  0x2b   :  { %534 = vmatmul.bf16.vlgmr.msra.gmra.mxu0 %v176_v38  ;;  %572 = vmatpush.bf16.msra.mxu3 %v906_v45 }
  0x2c   :  { %578 = vmatpush.bf16.msrb.mxu0 %v921_v35  ;;  %547 = vmatmul.bf16.vlgmr.msra.gmra.mxu1 %v177_v41 }
  0x2d   :  { %591 = vmatpush.bf16.msrb.mxu1 %v929_v36  ;;  %560 = vmatmul.bf16.vlgmr.msra.gmra.mxu2 %v178_v40 }
  0x2e   :  { %604 = vmatpush.bf16.msrb.mxu2 %v937_v37  ;;  %573 = vmatmul.bf16.vlgmr.msra.gmra.mxu3 %v179_v50 }
  0x30   :  { %579 = vmatpush.bf16.msrb.mxu0 %v920_v42 }
  0x31   :  { %592 = vmatpush.bf16.msrb.mxu1 %v928_v43 }
  0x32   :  { %605 = vmatpush.bf16.msrb.mxu2 %v936_v44 }
  0x34   :  { %580 = vmatpush.bf16.msrb.mxu0 %v919_v47 }
  0x35   :  { %593 = vmatpush.bf16.msrb.mxu1 %v927_v48 }
  0x36   :  { %606 = vmatpush.bf16.msrb.mxu2 %v935_v49 }
  0x38   :  { %581 = vmatpush.bf16.msrb.mxu0 %v918_v51 }
  0x39   :  { %594 = vmatpush.bf16.msrb.mxu1 %v926_v52 }
  0x3a   :  { %607 = vmatpush.bf16.msrb.mxu2 %v934_v53 }
  0x3c   :  { %582 = vmatpush.bf16.msrb.mxu0 %v917_v54 }
  0x3d   :  { %595 = vmatpush.bf16.msrb.mxu1 %v925_v55 }
  0x3e   :  { %608 = vmatpush.bf16.msrb.mxu2 %v933_v56 }
  0x40   :  { %583 = vmatpush.bf16.msrb.mxu0 %v916_v57 }
  0x41   :  { %596 = vmatpush.bf16.msrb.mxu1 %v924_v58 }
  0x42   :  { %609 = vmatpush.bf16.msrb.mxu2 %v932_v59 }
  0x44   :  { %584 = vmatpush.bf16.msrb.mxu0 %v915_v60 }
  0x45   :  { %597 = vmatpush.bf16.msrb.mxu1 %v923_v62 }
  0x46   :  { %610 = vmatpush.bf16.msrb.mxu2 %v931_v63 }
  0x48   :  { %585 = vmatpush.bf16.msrb.mxu0 %v914_v2 }
  0x49   :  { %598 = vmatpush.bf16.msrb.mxu1 %v922_v5 }
  0x4a   :  { %611 = vmatpush.bf16.msrb.mxu2 %v930_v6 }
  0x4b   :  { %586 = vmatmul.bf16.vlgmr.msrb.gmra.mxu0 %v180_v7 }
  0x4c   :  { %599 = vmatmul.bf16.vlgmr.msrb.gmra.mxu1 %v181_v8 }
  0x4d   :  { %612 = vmatmul.bf16.vlgmr.msrb.gmra.mxu2 %v182_v9 }
  0xa8   :  { %v535_v10 = vpop.f32.mrf.mxu0 }
  0xa9   :  { %v548_v11 = vpop.f32.mrf.mxu1  ;;  %v536_v18 = vadd.f32 %v943_v15, %v535_v10 }
  0xab   :  { %v549_v19 = vadd.f32 %v548_v11, %v536_v18 }
  0xb0   :  { %v561_v12 = vpop.f32.mrf.mxu2  ;;  %v537_v13 = vpop.f32.mrf.mxu0 }
  0xb1   :  { %v550_v14 = vpop.f32.mrf.mxu1  ;;  %v574_v16 = vpop.f32.mrf.mxu3  ;;  %v562_v21 = vadd.f32 %v561_v12, %v549_v19 }
  0xb3   :  { %v575_v22 = vadd.f32 %v574_v16, %v562_v21 }
  0xb8   :  { %v563_v17 = vpop.f32.mrf.mxu2 }
  0xb9   :  { %v576_v20 = vpop.f32.mrf.mxu3 }
  0xc8   :  { %v587_v23 = vpop.f32.mrf.mxu0 }
  0xc9   :  { %v600_v24 = vpop.f32.mrf.mxu1  ;;  %v588_v25 = vadd.f32 %v587_v23, %v575_v22 }
  0xcb   :  { %v601_v26 = vadd.f32 %v600_v24, %v588_v25 }
  0xd0   :  { %v613_v27 = vpop.f32.mrf.mxu2  ;;  %v589_v29 = vpop.f32.mrf.mxu0 }
  0xd1   :  { %v614_v28 = vadd.f32 %v613_v27, %v601_v26  ;;  %v602_v30 = vpop.f32.mrf.mxu1 }
  0xd3   :  { %617 = vmax.xlane.f32.xlu0 %v614_v28 }
  0xd8   :  { %v615_v31 = vpop.f32.mrf.mxu2 }
 0x146   :  { %v618_v32 = vpop.xlane.xlu0 %617 }
 0x147   :  { %v619_v33 = vsub.f32 %v614_v28, %v618_v32 }
 0x149   :  { %v620_v34 = vmul.f32 1.442695, %v619_v33 }
 0x14b   :  { %944 = vpow2.f32 %v620_v34 }
 0x151   :  { %v945_v35 = vpop.eup %944 }
 0x152   :  { %622 = vadd.xlane.f32.xlu0 %v945_v35 }
 0x1c5   :  { %v623_v36 = vpop.xlane.xlu0 %622 }
 0x1c6   :  { %946 = vrcp.f32 %v623_v36  ;;  %v635_v40 = vand.u32 2147483648, %v623_v36  ;;  %v633_v42 = vand.u32 2147483647, %v623_v36  ;;  %vm629_vm1 = vweird.f32 %v623_v36 }
 0x1c8   :  { %v636_v44 = vor.u32 1.1754944e-38, %v635_v40  ;;  %vm634_vm3 = vcmp.eq.f32.partialorder %v633_v42, 8.507059e+37 }
 0x1cc   :  { %v947_v37 = vpop.eup %946 }
 0x1cd   :  { %v625_v38 = vmul.f32 %v947_v37, %v623_v36  ;;  %vm630_vm0 = vweird.f32 %v947_v37 }
 0x1ce   :  { %vm631_vm2 = vmor %vm629_vm1, %vm630_vm0 }
 0x1cf   :  { %v626_v39 = vsub.f32 1.0, %v625_v38 }
 0x1d1   :  { %v627_v41 = vmul.f32 %v947_v37, %v626_v39 }
 0x1d3   :  { %v628_v43 = vadd.f32 %v947_v37, %v627_v41 }
 0x1d5   :  { %v632_v45 = vsel %vm631_vm2, %v947_v37, %v628_v43 }
 0x1d6   :  { %v637_v46 = vsel %vm634_vm3, %v636_v44, %v632_v45 }
 0x1d7   :  { %v638_v47 = vmul.f32 %v945_v35, %v637_v46 }
 0x1d9   :  { %639 = vst [vmem:[#allocation7] sm:$0xff] %v638_v47 }
 0x1da   :  { %650 = dma.vmem_to_hbm [thread:$0]  %s646_s24, 128, %s648_s27, [#allocation4]  }
 0x1db   :  { %1024 = dma.done.wait [#allocation4], 128  }
 0x1dc   :  { %1025 = vsyncadd [#allocation4], 4294967168 }
 0x1dd   :  { %655 = vsyncpa [#allocation3], 1 }
 0x1de   :  { %656 = vsyncpa [#allocation6], 1 }
 0x1df   :  { %657 = vsyncpa [#allocation4], 1 }

</bundles_post_ra>
